<compile_context>
chip_gen: v7x
topology: tpu7x:2x2x1
jax: 0.10.0
libtpu: 0.0.40
codegen_flags: <defaults>
</compile_context>

<pallas_src>
import functools

import jax
import jax.numpy as jnp
from jax.experimental import pallas as pl
from jax.experimental.pallas import tpu as pltpu


def _attention_kernel(x_ref, w1_ref, b1_ref, w2t_ref, b2_ref, o_ref):
    # x_ref  : (TB, L, D_in)  batch tile of the input
    # w1_ref : (D_in, dense)  b1_ref: (1, dense)
    # w2t_ref: (H, dense)     b2_ref: (H, 1)   (fc2 weight pre-transposed)
    # o_ref  : (TB, H, L)     transposed, lane-dense output; softmax over L
    tb, L, d_in = x_ref.shape
    H, dense = w2t_ref.shape

    # --- fc1 + tanh: fold the batch tile into the matmul M dim -------------
    x2 = x_ref[...].reshape(tb * L, d_in)
    h = jnp.tanh(
        jnp.dot(x2, w1_ref[...], preferred_element_type=jnp.float32)
        + b1_ref[...]
    )                                                    # (TB*L, dense) f32

    # --- fc2, producing the transposed (TB, H, L) scores directly ----------
    h3 = h.reshape(tb, L, dense).astype(w2t_ref.dtype)
    w2b = jnp.broadcast_to(w2t_ref[...][None], (tb, H, dense))
    s = jax.lax.dot_general(
        w2b, h3,
        dimension_numbers=(((2,), (2,)), ((0,), (0,))),   # contract dense, batch TB
        preferred_element_type=jnp.float32,
    ) + b2_ref[...][None]                                 # (TB, H, L) f32

    # --- softmax over the sequence axis (now the lane axis) ----------------
    s = s - jnp.max(s, axis=-1, keepdims=True)
    e = jnp.exp(s)
    denom = jnp.sum(e, axis=-1, keepdims=True)
    o_ref[...] = (e * pl.reciprocal(denom, approx=True)).astype(o_ref.dtype)


def _pick_batch_tile(B, L, max_rows=512, min_grid=2):
    """Largest divisor TB of B with TB*L <= max_rows, preferring >= min_grid steps."""
    divisors = [d for d in range(1, B + 1) if B % d == 0]
    cands = [d for d in divisors if d * L <= max_rows and B // d >= min_grid]
    if not cands:
        cands = [d for d in divisors if d * L <= max_rows]
    if not cands:
        cands = [1]
    return max(cands)


@functools.partial(jax.jit, static_argnames=("batch_tile", "compute_dtype"))
def attention_forward(x, w1, b1, w2, b2, *, batch_tile=None,
                      compute_dtype=jnp.float32):
    """x: (B, L, D_in) -> attention: (B, n_heads, L)  (matches torch forward)."""
    B, L, D_in = x.shape
    dense, H = w2.shape
    assert w1.shape == (D_in, dense)

    TB = batch_tile if batch_tile is not None else _pick_batch_tile(B, L)
    assert B % TB == 0, (B, TB)

    # Optional low-precision MXU inputs (v6e/v7x); biases / accum stay f32.
    xc = x.astype(compute_dtype)
    w1c = w1.astype(compute_dtype)
    w2t = jnp.transpose(w2).astype(compute_dtype)     # (H, dense)
    b1_2d = b1.reshape(1, dense).astype(jnp.float32)
    b2_2d = b2.reshape(H, 1).astype(jnp.float32)

    out = pl.pallas_call(
        _attention_kernel,
        out_shape=jax.ShapeDtypeStruct((B, H, L), x.dtype),
        grid_spec=pltpu.PrefetchScalarGridSpec(
            num_scalar_prefetch=0,
            grid=(B // TB,),
            in_specs=[
                pl.BlockSpec((TB, L, D_in), lambda i: (i, 0, 0)),
                pl.BlockSpec((D_in, dense), lambda i: (0, 0)),
                pl.BlockSpec((1, dense), lambda i: (0, 0)),
                pl.BlockSpec((H, dense), lambda i: (0, 0)),
                pl.BlockSpec((H, 1), lambda i: (0, 0)),
            ],
            out_specs=pl.BlockSpec((TB, H, L), lambda i: (i, 0, 0)),
        ),
        compiler_params=pltpu.CompilerParams(
            dimension_semantics=("parallel",),
        ),
    )(xc, w1c, b1_2d, w2t, b2_2d)

    # Output is already (B, H, L): no wrapper transpose / extra HBM pass.
    return out


def _init_linear(key, fan_in, fan_out):
    """Deterministic init matching nn.Linear's U(-1/sqrt(fan_in), 1/sqrt(fan_in))."""
    kw, kb = jax.random.split(key)
    bound = 1.0 / jnp.sqrt(fan_in)
    # stored as (in, out) so the math is x @ W (torch stores (out, in))
    w = jax.random.uniform(kw, (fan_in, fan_out), jnp.float32, -bound, bound)
    b = jax.random.uniform(kb, (fan_out,), jnp.float32, -bound, bound)
    return w, b


def _reference(x, w1, b1, w2, b2):
    h = jnp.tanh(x @ w1 + b1)
    s = h @ w2 + b2                       # (B, L, H)
    s = s - jnp.max(s, axis=1, keepdims=True)
    e = jnp.exp(s)
    sm = e / jnp.sum(e, axis=1, keepdims=True)
    return jnp.transpose(sm, (0, 2, 1))   # (B, H, L)


if __name__ == "__main__":
    # small shapes: batch=16, seq=16, input_dim=32, dense_dim=32, n_heads=4
    # -> batch tile TB=8 (M = TB*L = 128 rows), grid length 2.
    B, L, D_IN, DENSE, HEADS = 16, 16, 32, 32, 4

    key = jax.random.PRNGKey(0)
    kx, k1, k2 = jax.random.split(key, 3)

    x = jax.random.normal(kx, (B, L, D_IN), jnp.float32)
    w1, b1 = _init_linear(k1, D_IN, DENSE)
    w2, b2 = _init_linear(k2, DENSE, HEADS)

    ref = _reference(x, w1, b1, w2, b2)

    # f32 MXU path (v5e default)
    out = jax.block_until_ready(attention_forward(x, w1, b1, w2, b2))
    assert out.shape == (B, HEADS, L), out.shape
    assert jnp.allclose(out, ref, atol=1e-3, rtol=1e-3), "f32 mismatch vs reference"

    # bf16 MXU path (v6e/v7x recommendation); accumulation/softmax stay f32
    out_bf16 = jax.block_until_ready(
        attention_forward(x, w1, b1, w2, b2, compute_dtype=jnp.bfloat16)
    )
    assert out_bf16.shape == (B, HEADS, L), out_bf16.shape
    assert jnp.allclose(out_bf16, ref, atol=3e-2, rtol=3e-2), "bf16 mismatch vs reference"

    print("KERNEL_OK")
</pallas_src>

<mosaic_0001>
module attributes {stable_mosaic.version = 11 : i64} {
  func.func @_attention_kernel(%arg0: i32, %arg1: memref<8x16x32xf32, #tpu.memory_space<vmem>>, %arg2: memref<32x32xf32, #tpu.memory_space<vmem>>, %arg3: memref<1x32xf32, #tpu.memory_space<vmem>>, %arg4: memref<4x32xf32, #tpu.memory_space<vmem>>, %arg5: memref<4x1xf32, #tpu.memory_space<vmem>>, %arg6: memref<8x4x16xf32, #tpu.memory_space<vmem>>) attributes {dimension_semantics = [#tpu.dimension_semantics<parallel>], iteration_bounds = array<i64: 2>, scalar_prefetch = 0 : i64, scratch_operands = 0 : i64, tpu.core_type = #tpu.core_type<tc>, window_params = [{transform_indices = @transform_0, window_bounds = array<i64: 8, 16, 32>}, {pipeline_mode = #tpu.pipeline_mode<synchronous>, transform_indices = @transform_1, window_bounds = array<i64: 32, 32>}, {pipeline_mode = #tpu.pipeline_mode<synchronous>, transform_indices = @transform_2, window_bounds = array<i64: 1, 32>}, {pipeline_mode = #tpu.pipeline_mode<synchronous>, transform_indices = @transform_3, window_bounds = array<i64: 4, 32>}, {pipeline_mode = #tpu.pipeline_mode<synchronous>, transform_indices = @transform_4, window_bounds = array<i64: 4, 1>}, {transform_indices = @transform_5, window_bounds = array<i64: 8, 4, 16>}]} {
    %c0 = arith.constant 0 : index
    %c0_0 = arith.constant 0 : index
    %c0_1 = arith.constant 0 : index
    %0 = vector.load %arg1[%c0, %c0_0, %c0_1] : memref<8x16x32xf32, #tpu.memory_space<vmem>>, vector<8x16x32xf32>
    %1 = vector.shape_cast %0 : vector<8x16x32xf32> to vector<128x32xf32>
    %c0_2 = arith.constant 0 : index
    %c0_3 = arith.constant 0 : index
    %2 = vector.load %arg2[%c0_2, %c0_3] : memref<32x32xf32, #tpu.memory_space<vmem>>, vector<32x32xf32>
    %cst = arith.constant dense<0.000000e+00> : vector<128x32xf32>
    %3 = tpu.matmul %1, %2, %cst {dimension_numbers = #tpu.dot_dimension_numbers<[1], [0], [0], [1], [0, 0, 1, 1], [], []>} : vector<128x32xf32>, vector<32x32xf32>, vector<128x32xf32> -> vector<128x32xf32>
    %c0_4 = arith.constant 0 : index
    %c0_5 = arith.constant 0 : index
    %4 = vector.load %arg3[%c0_4, %c0_5] : memref<1x32xf32, #tpu.memory_space<vmem>>, vector<1x32xf32>
    %5 = vector.broadcast %4 : vector<1x32xf32> to vector<128x32xf32>
    %6 = arith.addf %3, %5 : vector<128x32xf32>
    %7 = math.tanh %6 : vector<128x32xf32>
    %8 = vector.shape_cast %7 : vector<128x32xf32> to vector<8x16x32xf32>
    %c0_6 = arith.constant 0 : index
    %c0_7 = arith.constant 0 : index
    %9 = vector.load %arg4[%c0_6, %c0_7] : memref<4x32xf32, #tpu.memory_space<vmem>>, vector<4x32xf32>
    %10 = vector.shape_cast %9 : vector<4x32xf32> to vector<1x4x32xf32>
    %11 = vector.shape_cast %10 : vector<1x4x32xf32> to vector<1x4x32xf32>
    %12 = vector.broadcast %11 : vector<1x4x32xf32> to vector<8x4x32xf32>
    %cst_8 = arith.constant dense<0.000000e+00> : vector<8x4x16xf32>
    %13 = tpu.matmul %12, %8, %cst_8 {dimension_numbers = #tpu.dot_dimension_numbers<[2], [2], [1], [1], [0, 0, 0, 1, 1, 1], [0], [0]>} : vector<8x4x32xf32>, vector<8x16x32xf32>, vector<8x4x16xf32> -> vector<8x4x16xf32>
    %c0_9 = arith.constant 0 : index
    %c0_10 = arith.constant 0 : index
    %14 = vector.load %arg5[%c0_9, %c0_10] : memref<4x1xf32, #tpu.memory_space<vmem>>, vector<4x1xf32>
    %15 = vector.shape_cast %14 : vector<4x1xf32> to vector<1x4x1xf32>
    %16 = vector.broadcast %15 : vector<1x4x1xf32> to vector<8x4x16xf32>
    %17 = arith.addf %13, %16 : vector<8x4x16xf32>
    %cst_11 = arith.constant dense<0xFF800000> : vector<8x4xf32>
    %18 = vector.multi_reduction <maximumf>, %17, %cst_11 [2] : vector<8x4x16xf32> to vector<8x4xf32>
    %19 = vector.shape_cast %18 : vector<8x4xf32> to vector<8x4x1xf32>
    %20 = vector.broadcast %19 : vector<8x4x1xf32> to vector<8x4x16xf32>
    %21 = arith.subf %17, %20 : vector<8x4x16xf32>
    %22 = math.exp %21 : vector<8x4x16xf32>
    %cst_12 = arith.constant dense<0.000000e+00> : vector<8x4xf32>
    %23 = vector.multi_reduction <add>, %22, %cst_12 [2] : vector<8x4x16xf32> to vector<8x4xf32>
    %24 = vector.shape_cast %23 : vector<8x4xf32> to vector<8x4x1xf32>
    %25 = tpu.reciprocal %24 {approx = true} : vector<8x4x1xf32> -> vector<8x4x1xf32>
    %26 = vector.broadcast %25 : vector<8x4x1xf32> to vector<8x4x16xf32>
    %27 = arith.mulf %22, %26 : vector<8x4x16xf32>
    %c0_13 = arith.constant 0 : index
    %c0_14 = arith.constant 0 : index
    %c0_15 = arith.constant 0 : index
    %28 = vector.load %arg6[%c0_13, %c0_14, %c0_15] : memref<8x4x16xf32, #tpu.memory_space<vmem>>, vector<8x4x16xf32>
    tpu.vector_store %arg6[%c0_13, %c0_14, %c0_15], %27 {strides = array<i32>} : memref<8x4x16xf32, #tpu.memory_space<vmem>>, vector<8x4x16xf32>,
    return
  }
  func.func @transform_0(%arg0: i32) -> (i32, i32, i32) {
    %c0_i32 = arith.constant 0 : i32
    %c0_i32_0 = arith.constant 0 : i32
    %c0_i32_1 = arith.constant 0 : i32
    return %arg0, %c0_i32, %c0_i32_0 : i32, i32, i32
  }
  func.func @transform_1(%arg0: i32) -> (i32, i32) {
    %c0_i32 = arith.constant 0 : i32
    %c0_i32_0 = arith.constant 0 : i32
    %c0_i32_1 = arith.constant 0 : i32
    return %c0_i32, %c0_i32_0 : i32, i32
  }
  func.func @transform_2(%arg0: i32) -> (i32, i32) {
    %c0_i32 = arith.constant 0 : i32
    %c0_i32_0 = arith.constant 0 : i32
    %c0_i32_1 = arith.constant 0 : i32
    return %c0_i32, %c0_i32_0 : i32, i32
  }
  func.func @transform_3(%arg0: i32) -> (i32, i32) {
    %c0_i32 = arith.constant 0 : i32
    %c0_i32_0 = arith.constant 0 : i32
    %c0_i32_1 = arith.constant 0 : i32
    return %c0_i32, %c0_i32_0 : i32, i32
  }
  func.func @transform_4(%arg0: i32) -> (i32, i32) {
    %c0_i32 = arith.constant 0 : i32
    %c0_i32_0 = arith.constant 0 : i32
    %c0_i32_1 = arith.constant 0 : i32
    return %c0_i32, %c0_i32_0 : i32, i32
  }
  func.func @transform_5(%arg0: i32) -> (i32, i32, i32) {
    %c0_i32 = arith.constant 0 : i32
    %c0_i32_0 = arith.constant 0 : i32
    %c0_i32_1 = arith.constant 0 : i32
    return %arg0, %c0_i32, %c0_i32_0 : i32, i32, i32
  }
}

</mosaic_0001>

<bundles_post_ra>
// kernel: attention_forward.1
= control target key start
LH: loop header
LB: loop body
LE: loop exit
PB: predicated region body
PF: predicated region fallthrough
CT: control target
= control target key end

     0   :  { %10 = vsyncpa [#allocation3], 0  ;;  %s2202_s0 = inlined_call_operand.hbm [shape: f32[16,16,32], index: 0, kind: input, shape index: {}]   ;;  %s2203_s1 = inlined_call_operand.hbm [shape: f32[32,32], index: 1, kind: input, shape index: {}]   ;;  %s2204_s2 = inlined_call_operand.vmem [shape: f32[1,32], index: 2, kind: input, shape index: {}]   ;;  %s2205_s3 = inlined_call_operand.vmem [shape: f32[4,32], index: 3, kind: input, shape index: {}]   ;;  %s2206_s4 = inlined_call_operand.vmem [shape: f32[4,1], index: 4, kind: input, shape index: {}]   ;;  %s2207_s5 = inlined_call_operand.hbm [shape: f32[16,4,16], index: 5, kind: output, shape index: {}]  }
   0x1   :  { %12 = vsyncpa [#allocation3 + $0x1], 0 }
   0x2   :  { %13 = vsyncpa [#allocation6], 0 }
   0x3   :  { %14 = vsyncpa [#allocation4], 0 }
   0x4   :  { %16 = vsyncpa [#allocation4 + $0x1], 0  ;;  %s1844_s18 = smov 0   ;;  %s1846_s19 = smov 0  }
   0x5   :  { %s1848_s20 = smov 0   ;;  %s1850_s21 = smov 0  }
   0x6 LB: > { %s1865_s22 = sadd.s32 4294967295, %s1801_s21   ;;  %s1310_s23 = sadd.s32 4294967294, %s1801_s21   ;;  %s1801_s21 = sphi %s1850_s21, %s2229_s21   ;;  %s1797_s20 = sphi %s1848_s20, %s2228_s20   ;;  %s1793_s19 = sphi %s1846_s19, %s2227_s19   ;;  %s1789_s18 = sphi %s1844_s18, %s2226_s18  }
   0x7   : > { %p42_p0 = scmp.ne.s32.totalorder %s1793_s19, %s1789_s18  ;;  %p2208_p1 = scmp.eq.s32.totalorder %s1865_s22, 0 }
   0x8   : > { %p156_p3 = scmp.eq.s32.totalorder %s1310_s23, 1  ;;  %p1311_p5 = scmp.ge.s32.totalorder %s1801_s21, 1 }
   0x9   : > { %p1874_p4 = por %p2208_p1, %p42_p0  ;;  %p163_p7 = scmp.lt.s32.totalorder %s1801_s21, 3 }
   0xa   : > { %p1879_p6 = por %p156_p3, %p42_p0  ;;  %s1803_s27 = smov [#allocation5]  }
   0xb   : > { %s2211_s24 = scalar_select %p1874_p4, 1, 0 }
   0xc   : > { %s2212_s25 = scalar_select %p1879_p6, 1, 0 }
   0xd   : > { %p1884_p8 = pnand %p1311_p5, %p163_p7  ;;  %s175_s28 = sshll.u32 %s1803_s27, 4  ;;  %s1888_s28 = int_to_ptr.vmem [resolvable:$true] %s175_s28 }
   0xe   : > { %s1900_s30 = sadd.s32 1, %s1801_s21   ;;  %s29_s6 = sadd.s32 1, %s1797_s20 }
   0xf   : > { %s2213_s26 = scalar_select %p1884_p8, 1, 0 }
  0x10   : > { %p1551_p9 = pneg %p1884_p8  ;;  %s26_s7 = ssub.s32 %s1801_s21, %s1900_s30 }
  0x11   : > { %s1673_s10 = scalar_lea.hbm %s2203_s1, 512 }
  0x12   : > { %p1895_p11 = pnand %p1551_p9, %p2208_p1  ;;  %p1674_p12 = scmp.ne.s32.totalorder %s2203_s1, %s1673_s10 }
  0x13   : > { %p1680_p5 = scmp.lt.u32.totalorder %s1673_s10, %s2203_s1 }
  0x14   : > { %p1675_p13 = pneg %p1895_p11 }
  0x16   : > { %p1676_p0 = pnand %p1675_p13, %p1674_p12 }
  0x18   : > { %p1677_p3 = pneg %p1676_p0 }
  0x1a   : > { %p1682_p7 = pnand %p1680_p5, %p1677_p3 }
  0x1c   : > { %1685 = shalt.err (!%p1682_p7)
}
  0x1d   : > { %s1686_s15 = scalar_lea.vmem %s1888_s28, 512  ;;  %p1694_p2 = scmp.lt.s32.totalorder %s1888_s28, %s1888_s28 }
  0x1e   : > { %p1687_p9 = scmp.ne.s32.totalorder %s1888_s28, %s1686_s15  ;;  %p1695_p6 = scmp.lt.s32.totalorder %s1686_s15, %s1686_s15 }
  0x20   : > { %p1689_p10 = pnand %p1687_p9, %p1675_p13  ;;  %p1696_p4 = por %p1695_p6, %p1694_p2 }
  0x22   : > { %p1690_p1 = pneg %p1689_p10 }
  0x24   : > { %p1697_p8 = pnand %p1696_p4, %p1690_p1 }
  0x26   : > { %1700 = shalt.err (!%p1697_p8)
}
  0x27   : > { %s1804_s16 = smov 128   ;;  %s1805_s17 = smov 8  }
  0x28   : > { %1554 = dma.hbm_to_vmem [thread:$0]  (!%p1895_p11), %s2203_s1, 512, %s1888_s28, [#allocation6], %s1804_s16, %s1804_s16, %s1805_s17  }
  0x29   : > { %p27_p1 = scmp.eq.s32.totalorder %s26_s7, 0  ;;  %p36_p2 = scmp.ne.s32.totalorder %s1797_s20, %s1793_s19 }
  0x2a   : > { %p37_p4 = scmp.eq.s32.totalorder %s1801_s21, 0  ;;  %p1564_p6 = scmp.lt.s32.totalorder %s1801_s21, 2 }
  0x2b   : > { %s1934_s8 = scalar_select %p27_p1, %s1797_s20, %s29_s6  }
  0x2c   : > { %p38_p8 = por %p37_p4, %p36_p2  ;;  %p2215_p10 = scmp.eq.s32.totalorder %s1865_s22, 1 }
  0x2d   : > { %s198_s29 = sand.u32 1, %s1797_s20   ;;  %s1369_s10 = sshll.u32 %s1801_s21, 11 }
  0x2e   : > { %p1938_p12 = por %p2215_p10, %p36_p2  ;;  %s1314_s11 = sshll.u32 %s198_s29, 7 }
  0x2f   : > { %s1947_s14 = scalar_lea.hbm %s2202_s0, %s1369_s10  ;;  %s202_s28 = scalar_lea.vmem [#allocation2], %s1314_s11 }
  0x30   : > { %s210_s6 = sshll.u32 %s202_s28, 4  ;;  %p1949_p11 = pnand %p1564_p6, %p38_p8  ;;  %s1953_s6 = int_to_ptr.vmem [resolvable:$true] %s210_s6 }
  0x31   : > { %s1955_s15 = scalar_lea.sflag [#allocation3], %s198_s29  ;;  %s1701_s23 = scalar_lea.hbm %s1947_s14, 2048 }
  0x32   : > { %p1702_p13 = scmp.ne.s32.totalorder %s1947_s14, %s1701_s23  ;;  %p1703_p0 = pneg %p1949_p11 }
  0x33   : > { %s1706_s11 = scalar_lea.hbm %s2202_s0, 4096  ;;  %p1707_p7 = scmp.lt.u32.totalorder %s1947_s14, %s2202_s0 }
  0x34   : > { %p1704_p3 = pnand %p1703_p0, %p1702_p13  ;;  %p1708_p9 = scmp.lt.u32.totalorder %s1706_s11, %s1701_s23 }
  0x35   : > { %p1710_p2 = scmp.lt.u32.totalorder %s1701_s23, %s1947_s14 }
  0x36   : > { %p1705_p5 = pneg %p1704_p3  ;;  %p1709_p1 = por %p1708_p9, %p1707_p7 }
  0x38   : > { %p1711_p4 = por %p1710_p2, %p1709_p1 }
  0x3a   : > { %p1712_p6 = pnand %p1711_p4, %p1705_p5 }
  0x3c   : > { %1715 = shalt.err (!%p1712_p6)
}
  0x3d   : > { %s1716_s29 = scalar_lea.vmem %s1953_s6, 2048  ;;  %s1806_s28 = smov [#allocation2]  }
  0x3e   : > { %p1717_p8 = scmp.ne.s32.totalorder %s1953_s6, %s1716_s29  ;;  %s1721_s27 = sshll.u32 %s1806_s28, 4  ;;  %s1722_s27 = int_to_ptr.vmem [resolvable:$false] %s1721_s27 }
  0x3f   : > { %s1723_s10 = scalar_lea.vmem %s1722_s27, 4096  ;;  %p1724_p3 = scmp.lt.s32.totalorder %s1953_s6, %s1722_s27 }
  0x40   : > { %p1719_p10 = pnand %p1717_p8, %p1703_p0  ;;  %p1725_p7 = scmp.lt.s32.totalorder %s1723_s10, %s1716_s29 }
  0x42   : > { %p1720_p13 = pneg %p1719_p10  ;;  %p1726_p9 = por %p1725_p7, %p1724_p3 }
  0x44   : > { %p1727_p1 = pnand %p1726_p9, %p1720_p13 }
  0x46   : > { %1730 = shalt.err (!%p1727_p1)
}
  0x47   : > { %1558 = dma.hbm_to_vmem [thread:$0]  (!%p1949_p11), %s1947_s14, 2048, %s1953_s6, %s1955_s15, %s1804_s16, %s1804_s16, %s1805_s17  }
  0x48   : > { %p2218_p0 = scmp.ne.s32.totalorder %s2213_s26, 0 }
  0x49   : > { %s1989_s23 = sand.u32 (!%p2218_p0), 1, %s1793_s19   ;;  %p2219_p5 = scmp.ne.s32.totalorder (!%p2218_p0), %s2211_s24, 0 }
  0x4a   : > { %222 = sbr.rel (%p2218_p0) target bundleno = 914 (0x392), region = 40  ;;  %s1319_s11 = sshll.u32 (!%p2218_p0), %s1989_s23, 7 }
  0x4b   : > { %s225_s12 = scalar_lea.sflag (!%p2218_p0), [#allocation3], %s1989_s23  ;;  %s1993_s13 = scalar_lea.vmem (!%p2218_p0), [#allocation2], %s1319_s11 }
  0x51   : > { %1776 = dma.done.wait (%p2219_p5), %s225_s12, 2048  }
  0x52   : > { %1778 = vsyncadd (%p2219_p5), %s225_s12, 4294965248  ;;  %p2220_p11 = scmp.eq.s32.totalorder %s1865_s22, 0 }
  0x54   : > { %1780 = dma.done.wait (%p2220_p11), [#allocation6], 512   ;;  %p2221_p2 = pmov %p2220_p11 }
  0x55   : > { %vm288_vm0 = vcmask 261120   ;;  %v277_v0 = vld [vmem:[#allocation5] sm:$0xff]  ;;  %v278_v1 = vld [vmem:[#allocation5 + $0x8] sm:$0xff]  ;;  %v279_v2 = vld [vmem:[#allocation5 + $0x10] sm:$0xff]  ;;  %v1807_v22 = vmov 0.0|0.0   ;;  %vm1808_vm1 = vmmov 0  }
  0x56   : > { %1782 = vsyncadd (%p2221_p2), [#allocation6], 4294966784  ;;  %v1503_v3 = vpack.c.bf16 %v278_v1, %v277_v0  ;;  %v280_v4 = vld [vmem:[#allocation5 + $0x18] sm:$0xff]  ;;  %v261_v5 = vld [vmem:[%s1993_s13] sm:$0xff]  ;;  %1511 = vmatprep.subr.bf16.mxu1 %v1807_v22  ;;  %v1809_v23 = vmov 0.0   ;;  %v1810_v25 = vmov 0  }
  0x57   : > { %v1507_v6 = vpack.c.bf16 %v280_v4, %v279_v2  ;;  %1423 = vmatprep.mubr.msk.f32.mxu0 %vm288_vm0, %v261_v5  ;;  %v262_v7 = vld [vmem:[%s1993_s13 + $0x8] sm:$0xff]  ;;  %v263_v8 = vld [vmem:[%s1993_s13 + $0x10] sm:$0xff]  ;;  %v264_v9 = vld [vmem:[%s1993_s13 + $0x18] sm:$0xff]  ;;  %1451 = vmatprep.mubr.msk.f32.mxu1 %vm1808_vm1, %v1809_v23  ;;  %vm1116_vm3 = vcmask 125952   ;;  %s1321_s7 = sshll.u32 %s1989_s23, 5  ;;  %s1370_s29 = sshll.u32 %s1865_s22, 9 }
  0x58   : > { %1504 = vmatprep.subr.bf16.mxu0 %v1503_v3  ;;  %v265_v10 = vld [vmem:[%s1993_s13 + $0x20] sm:$0xff]  ;;  %v266_v11 = vld [vmem:[%s1993_s13 + $0x28] sm:$0xff]  ;;  %v267_v12 = vld [vmem:[%s1993_s13 + $0x30] sm:$0xff]  ;;  %1608 = vset.pattern.permute.xlu0 %v1810_v25  ;;  %s2133_s15 = scalar_lea.vmem [#allocation7], %s1321_s7  ;;  %s2154_s11 = scalar_lea.hbm %s2207_s5, %s1370_s29 }
  0x59   : > { %1506 = vmatpush3.bf16.msra.mxu0 %v1503_v3  ;;  %v268_v13 = vld [vmem:[%s1993_s13 + $0x38] sm:$0xff]  ;;  %v269_v14 = vld [vmem:[%s1993_s13 + $0x40] sm:$0xff]  ;;  %v270_v15 = vld [vmem:[%s1993_s13 + $0x48] sm:$0xff]  ;;  %s1227_s28 = sshll.u32 %s2133_s15, 4  ;;  %s1214_s12 = scalar_lea.sflag [#allocation4], %s1989_s23  ;;  %s2156_s28 = int_to_ptr.vmem [resolvable:$true] %s1227_s28 }
  0x5a   : > { %1508 = vmatprep.subr.bf16.mxu0 %v1507_v6  ;;  %v271_v16 = vld [vmem:[%s1993_s13 + $0x50] sm:$0xff]  ;;  %v272_v17 = vld [vmem:[%s1993_s13 + $0x58] sm:$0xff]  ;;  %v273_v18 = vld [vmem:[%s1993_s13 + $0x60] sm:$0xff]  ;;  %s1811_s22 = smov [#allocation7]  }
  0x5b   : > { %v274_v19 = vld [vmem:[%s1993_s13 + $0x68] sm:$0xff]  ;;  %v275_v20 = vld [vmem:[%s1993_s13 + $0x70] sm:$0xff]  ;;  %v276_v21 = vld [vmem:[%s1993_s13 + $0x78] sm:$0xff]  ;;  %s1731_s13 = scalar_lea.vmem %s2156_s28, 512  ;;  %s1735_s24 = sshll.u32 %s1811_s22, 4  ;;  %s1736_s24 = int_to_ptr.vmem [resolvable:$false] %s1735_s24 }
  0x5c   : > { %v499_v24 = vld [vmem:[%s2206_s4] sm:$0xf]  ;;  %vm2059_vm2 = vmpackc.low %vm288_vm0, %vm288_vm0  ;;  %p1732_p4 = scmp.ne.s32.totalorder %s2156_s28, %s1731_s13  ;;  %s1737_s26 = scalar_lea.vmem %s1736_s24, 1024 }
  0x5d   : > { %1510 = vmatpush3.bf16.msra.mxu0 %v1507_v6  ;;  %502 = vperm.xlu0 %1608, %v499_v24   ;;  %v2047_v26 = vld [vmem:[%s2204_s2] ss:$0 sm:$0xff]  ;;  %p1738_p10 = scmp.lt.s32.totalorder %s2156_s28, %s1736_s24  ;;  %p1739_p13 = scmp.lt.s32.totalorder %s1737_s26, %s1731_s13 }
  0x5e   : > { %1527 = vmatprep.subr.bf16.mxu0 %v1807_v22  ;;  %v498_v56 = vld [vmem:[%s2205_s3] sm:$0xf]  ;;  %p1733_p6 = pnand %p1732_p4, %p1938_p12 }
  0x5f   : > { %p1740_p3 = por %p1739_p13, %p1738_p10 }
  0x60   : > { %1424 = vmatmul.mubr.msk.f32.vlgmr.msra.gmra.mrb[0].mxu0 %vm288_vm0, %v262_v7  ;;  %p1734_p8 = pneg %p1733_p6 }
  0x61   : > { %1426 = vmatprep.mubr.msk.f32.mxu0 %vm288_vm0, %v263_v8 }
  0x62   : > { %p1741_p7 = pnand %p1740_p3, %p1734_p8 }
  0x64   : > { %1427 = vmatmul.mubr.msk.f32.gmra.mrb[2].mxu0 %vm288_vm0, %v264_v9 }
  0x65   : > { %1429 = vmatprep.mubr.msk.f32.mxu0 %vm288_vm0, %v265_v10 }
  0x68   : > { %1430 = vmatmul.mubr.msk.f32.gmra.mrb[4].mxu0 %vm288_vm0, %v266_v11 }
  0x69   : > { %1432 = vmatprep.mubr.msk.f32.mxu0 %vm288_vm0, %v267_v12 }
  0x6c   : > { %1433 = vmatmul.mubr.msk.f32.gmra.mrb[6].mxu0 %vm288_vm0, %v268_v13 }
  0x6d   : > { %1435 = vmatprep.mubr.msk.f32.mxu0 %vm288_vm0, %v269_v14 }
  0x70   : > { %1436 = vmatmul.mubr.msk.f32.gmra.mrb[8].mxu0 %vm288_vm0, %v270_v15 }
  0x71   : > { %1438 = vmatprep.mubr.msk.f32.mxu0 %vm288_vm0, %v271_v16 }
  0x74   : > { %1439 = vmatmul.mubr.msk.f32.gmra.mrb[10].mxu0 %vm288_vm0, %v272_v17 }
  0x75   : > { %1441 = vmatprep.mubr.msk.f32.mxu0 %vm288_vm0, %v273_v18 }
  0x78   : > { %1442 = vmatmul.mubr.msk.f32.gmra.mrb[12].mxu0 %vm288_vm0, %v274_v19 }
  0x79   : > { %1444 = vmatprep.mubr.msk.f32.mxu0 %vm288_vm0, %v275_v20 }
  0x7c   : > { %1445 = vmatmul.mubr.msk.f32.gmra.mrb[14].mxu0 %vm288_vm0, %v276_v21 }
  0x7d   : > { %1479 = vmatprep.mubr.msk.f32.mxu0 %vm1808_vm1, %v1809_v23 }
  0xdc   : > { %v503_v21 = vpop.permute.xlu0 %502 }
 0x133   : > { %v1425_v27 = vpop.f32.mrb[0].mxu0 }
 0x134   : > { %v409_v28 = vadd.f32 %v1425_v27, %v2047_v26  ;;  %v403_v29 = vpop.f32.mrb[1].mxu0 }
 0x135   : > { %v404_v30 = vadd.f32 %v2047_v26, %v403_v29 }
 0x136   : > { %1609 = vtanh.f32 %v409_v28 }
 0x137   : > { %1611 = vtanh.f32 %v404_v30  ;;  %v1428_v31 = vpop.f32.mrb[2].mxu0 }
 0x138   : > { %v419_v32 = vadd.f32 %v1428_v31, %v2047_v26  ;;  %v413_v33 = vpop.f32.mrb[3].mxu0 }
 0x139   : > { %v414_v34 = vadd.f32 %v2047_v26, %v413_v33 }
 0x13a   : > { %1613 = vtanh.f32 %v419_v32 }
 0x13b   : > { %1615 = vtanh.f32 %v414_v34  ;;  %v1431_v35 = vpop.f32.mrb[4].mxu0 }
 0x13c   : > { %v429_v36 = vadd.f32 %v1431_v35, %v2047_v26  ;;  %v423_v37 = vpop.f32.mrb[5].mxu0 }
 0x13d   : > { %v424_v38 = vadd.f32 %v2047_v26, %v423_v37 }
 0x13e   : > { %1617 = vtanh.f32 %v429_v36 }
 0x13f   : > { %1619 = vtanh.f32 %v424_v38  ;;  %v1434_v39 = vpop.f32.mrb[6].mxu0 }
 0x140   : > { %v1610_v40 = vpop.eup %1609  ;;  %v439_v41 = vadd.f32 %v1434_v39, %v2047_v26  ;;  %v433_v42 = vpop.f32.mrb[7].mxu0 }
 0x141   : > { %v1612_v43 = vpop.eup %1611  ;;  %v434_v44 = vadd.f32 %v2047_v26, %v433_v42 }
 0x142   : > { %1621 = vtanh.f32 %v439_v41  ;;  %v1512_v46 = vpack.c.bf16 %v1610_v40, %v1612_v43 }
 0x143   : > { %1623 = vtanh.f32 %v434_v44  ;;  %v1437_v47 = vpop.f32.mrb[8].mxu0 }
 0x144   : > { %v1614_v48 = vpop.eup %1613  ;;  %v449_v49 = vadd.f32 %v1437_v47, %v2047_v26  ;;  %v443_v50 = vpop.f32.mrb[9].mxu0  ;;  %1514 = vmatpush3.bf16.xpose.msk.msra.mxu1 %vm2059_vm2, %v1512_v46 }
 0x145   : > { %v1616_v51 = vpop.eup %1615  ;;  %v444_v52 = vadd.f32 %v2047_v26, %v443_v50  ;;  %1515 = vmatprep.subr.bf16.mxu1 %v1807_v22 }
 0x146   : > { %1625 = vtanh.f32 %v449_v49  ;;  %v1516_v53 = vpack.c.bf16 %v1614_v48, %v1616_v51 }
 0x147   : > { %1627 = vtanh.f32 %v444_v52  ;;  %v1440_v54 = vpop.f32.mrb[10].mxu0 }
 0x148   : > { %v1618_v55 = vpop.eup %1617  ;;  %v459_v57 = vadd.f32 %v1440_v54, %v2047_v26  ;;  %v453_v58 = vpop.f32.mrb[11].mxu0 }
 0x149   : > { %v1620_v59 = vpop.eup %1619  ;;  %v454_v60 = vadd.f32 %v2047_v26, %v453_v58 }
 0x14a   : > { %1629 = vtanh.f32 %v459_v57  ;;  %v1520_v61 = vpack.c.bf16 %v1618_v55, %v1620_v59 }
 0x14b   : > { %1452 = vmatmul.mubr.msk.f32.vlgmr.msra.gmra.mrb[0].mxu1 %vm288_vm0, %v498_v56  ;;  %1631 = vtanh.f32 %v454_v60  ;;  %v1443_v62 = vpop.f32.mrb[12].mxu0 }
 0x14c   : > { %v1622_v63 = vpop.eup %1621  ;;  %1518 = vmatpush3.bf16.xpose.msk.msra.mxu1 %vm2059_vm2, %v1516_v53  ;;  %v469_v0 = vadd.f32 %v1443_v62, %v2047_v26  ;;  %v463_v1 = vpop.f32.mrb[13].mxu0  ;;  %1458 = vmatprep.mubr.msk.f32.mxu1 %vm1808_vm1, %v1809_v23 }
 0x14d   : > { %v1624_v2 = vpop.eup %1623  ;;  %v464_v3 = vadd.f32 %v2047_v26, %v463_v1  ;;  %1519 = vmatprep.subr.bf16.mxu1 %v1807_v22 }
 0x14e   : > { %1633 = vtanh.f32 %v469_v0  ;;  %v1524_v4 = vpack.c.bf16 %v1622_v63, %v1624_v2 }
 0x14f   : > { %1635 = vtanh.f32 %v464_v3  ;;  %v1446_v5 = vpop.f32.mrb[14].mxu0 }
 0x150   : > { %v1626_v6 = vpop.eup %1625  ;;  %v479_v7 = vadd.f32 %v1446_v5, %v2047_v26  ;;  %v473_v8 = vpop.f32.mrb[15].mxu0 }
 0x151   : > { %v1628_v9 = vpop.eup %1627  ;;  %v474_v10 = vadd.f32 %v2047_v26, %v473_v8 }
 0x152   : > { %v1528_v11 = vpack.c.bf16 %v1626_v6, %v1628_v9  ;;  %1637 = vtanh.f32 %v479_v7 }
 0x153   : > { %1459 = vmatmul.mubr.msk.f32.vlgmr.msra.gmra.mrb[2].mxu1 %vm288_vm0, %v498_v56  ;;  %1639 = vtanh.f32 %v474_v10 }
 0x154   : > { %v1630_v12 = vpop.eup %1629  ;;  %1522 = vmatpush3.bf16.xpose.msk.msra.mxu1 %vm2059_vm2, %v1520_v61  ;;  %1530 = vmatpush3.bf16.xpose.msk.msra.mxu0 %vm2059_vm2, %v1528_v11 }
 0x155   : > { %v1632_v13 = vpop.eup %1631  ;;  %1465 = vmatprep.mubr.msk.f32.mxu1 %vm1808_vm1, %v1809_v23  ;;  %1523 = vmatprep.subr.bf16.mxu1 %v1807_v22 }
 0x156   : > { %1535 = vmatprep.subr.bf16.mxu0 %v1807_v22  ;;  %v1532_v14 = vpack.c.bf16 %v1630_v12, %v1632_v13 }
 0x158   : > { %v1634_v15 = vpop.eup %1633 }
 0x159   : > { %v1636_v16 = vpop.eup %1635 }
 0x15a   : > { %v1536_v17 = vpack.c.bf16 %v1634_v15, %v1636_v16 }
 0x15b   : > { %1466 = vmatmul.mubr.msk.f32.vlgmr.msra.gmra.mrb[4].mxu1 %vm288_vm0, %v498_v56  ;;  %1480 = vmatmul.mubr.msk.f32.vlgmr.msra.gmra.mrb[16].mxu0 %vm288_vm0, %v498_v56 }
 0x15c   : > { %v1638_v18 = vpop.eup %1637  ;;  %1526 = vmatpush3.bf16.xpose.msk.msra.mxu1 %vm2059_vm2, %v1524_v4  ;;  %1538 = vmatpush3.bf16.xpose.msk.msra.mxu0 %vm2059_vm2, %v1536_v17 }
 0x15d   : > { %v1640_v19 = vpop.eup %1639  ;;  %1472 = vmatprep.mubr.msk.f32.mxu1 %vm1808_vm1, %v1809_v23  ;;  %1531 = vmatprep.subr.bf16.mxu1 %v1807_v22 }
 0x15e   : > { %1493 = vmatprep.mubr.msk.f32.mxu0 %vm1808_vm1, %v1809_v23  ;;  %v1540_v20 = vpack.c.bf16 %v1638_v18, %v1640_v19 }
 0x163   : > { %1473 = vmatmul.mubr.msk.f32.vlgmr.msra.gmra.mrb[6].mxu1 %vm288_vm0, %v498_v56  ;;  %1494 = vmatmul.mubr.msk.f32.vlgmr.msra.gmra.mrb[18].mxu0 %vm288_vm0, %v498_v56 }
 0x164   : > { %1534 = vmatpush3.bf16.xpose.msk.msra.mxu1 %vm2059_vm2, %v1532_v14  ;;  %1486 = vmatprep.mubr.msk.f32.mxu1 %vm1808_vm1, %v1809_v23 }
 0x165   : > { %1539 = vmatprep.subr.bf16.mxu1 %v1807_v22 }
 0x16b   : > { %1487 = vmatmul.mubr.msk.f32.vlgmr.msra.gmra.mrb[8].mxu1 %vm288_vm0, %v498_v56 }
 0x16c   : > { %1542 = vmatpush3.bf16.xpose.msk.msra.mxu1 %vm2059_vm2, %v1540_v20  ;;  %1500 = vmatprep.mubr.msk.f32.mxu1 %vm1808_vm1, %v1809_v23 }
 0x173   : > { %1501 = vmatmul.mubr.msk.f32.vlgmr.msra.gmra.mrb[10].mxu1 %vm288_vm0, %v498_v56 }
 0x21e   : > { %v580_v24 = vpop.f32.mrb[0].mxu1 }
 0x21f   : > { %v581_v25 = vadd.f32 %v580_v24, %v503_v21  ;;  %v1453_v26 = vpop.f32.mrb[1].mxu1 }
 0x221   : > { %v1117_v27 = vsel %vm1116_vm3, %v581_v25, -inf }
 0x222   : > { %1118 = vmax.xlane.f32.xlu0 %v1117_v27 }
 0x226   : > { %v656_v28 = vpop.f32.mrb[2].mxu1 }
 0x227   : > { %v657_v22 = vadd.f32 %v656_v28, %v503_v21  ;;  %v1460_v29 = vpop.f32.mrb[3].mxu1 }
 0x229   : > { %v1120_v30 = vsel %vm1116_vm3, %v657_v22, -inf }
 0x22a   : > { %1121 = vmax.xlane.f32.xlu1 %v1120_v30 }
 0x22e   : > { %v732_v31 = vpop.f32.mrb[4].mxu1  ;;  %v884_v32 = vpop.f32.mrb[16].mxu0 }
 0x22f   : > { %v733_v33 = vadd.f32 %v732_v31, %v503_v21  ;;  %v1467_v23 = vpop.f32.mrb[5].mxu1  ;;  %v1481_v34 = vpop.f32.mrb[17].mxu0  ;;  %v885_v35 = vadd.f32 %v884_v32, %v503_v21 }
 0x231   : > { %v1123_v36 = vsel %vm1116_vm3, %v733_v33, -inf  ;;  %v1129_v37 = vsel %vm1116_vm3, %v885_v35, -inf }
 0x232   : > { %1124 = vmax.xlane.f32.xlu1 %v1123_v36 }
 0x236   : > { %1130 = vmax.xlane.f32.xlu1 %v1129_v37  ;;  %v808_v38 = vpop.f32.mrb[6].mxu1  ;;  %v1036_v39 = vpop.f32.mrb[18].mxu0 }
 0x237   : > { %v809_v40 = vadd.f32 %v808_v38, %v503_v21  ;;  %v1474_v41 = vpop.f32.mrb[7].mxu1  ;;  %v1495_v42 = vpop.f32.mrb[19].mxu0  ;;  %v1037_v43 = vadd.f32 %v1036_v39, %v503_v21 }
 0x239   : > { %v1126_v44 = vsel %vm1116_vm3, %v809_v40, -inf  ;;  %v1135_v45 = vsel %vm1116_vm3, %v1037_v43, -inf }
 0x23a   : > { %1127 = vmax.xlane.f32.xlu1 %v1126_v44 }
 0x23e   : > { %1136 = vmax.xlane.f32.xlu1 %v1135_v45  ;;  %v960_v46 = vpop.f32.mrb[8].mxu1 }
 0x23f   : > { %v961_v47 = vadd.f32 %v960_v46, %v503_v21  ;;  %v1488_v48 = vpop.f32.mrb[9].mxu1 }
 0x241   : > { %v1132_v49 = vsel %vm1116_vm3, %v961_v47, -inf }
 0x242   : > { %1133 = vmax.xlane.f32.xlu1 %v1132_v49 }
 0x246   : > { %v1112_v50 = vpop.f32.mrb[10].mxu1 }
 0x247   : > { %v1113_v51 = vadd.f32 %v1112_v50, %v503_v21  ;;  %v1502_v52 = vpop.f32.mrb[11].mxu1 }
 0x249   : > { %v1138_v53 = vsel %vm1116_vm3, %v1113_v51, -inf }
 0x24a   : > { %1139 = vmax.xlane.f32.xlu1 %v1138_v53 }
 0x2af   : > { %v1119_v54 = vpop.xlane.xlu0 %1118 }
 0x2b0   : > { %v1141_v55 = vsub.f32 %v581_v25, %v1119_v54 }
 0x2b2   : > { %v1149_v56 = vmul.f32 1.442695, %v1141_v55 }
 0x2b4   : > { %1641 = vpow2.f32 %v1149_v56 }
 0x2b7   : > { %v1122_v57 = vpop.xlane.xlu1 %1121 }
 0x2b8   : > { %v1142_v58 = vsub.f32 %v657_v22, %v1122_v57 }
 0x2ba   : > { %v1151_v59 = vmul.f32 1.442695, %v1142_v58 }
 0x2bc   : > { %1643 = vpow2.f32 %v1151_v59 }
 0x2be   : > { %v1642_v60 = vpop.eup %1641 }
 0x2bf   : > { %v1125_v61 = vpop.xlane.xlu1 %1124  ;;  %v1165_v62 = vsel %vm1116_vm3, %v1642_v60, 0.0 }
 0x2c0   : > { %v1143_v63 = vsub.f32 %v733_v33, %v1125_v61  ;;  %1166 = vadd.xlane.f32.xlu1 %v1165_v62 }
 0x2c2   : > { %v1153_v0 = vmul.f32 1.442695, %v1143_v63 }
 0x2c3   : > { %v1131_v1 = vpop.xlane.xlu1 %1130 }
 0x2c4   : > { %1645 = vpow2.f32 %v1153_v0  ;;  %v1145_v2 = vsub.f32 %v885_v35, %v1131_v1 }
 0x2c6   : > { %v1644_v3 = vpop.eup %1643  ;;  %v1157_v4 = vmul.f32 1.442695, %v1145_v2 }
 0x2c7   : > { %v1128_v5 = vpop.xlane.xlu1 %1127  ;;  %v1168_v6 = vsel %vm1116_vm3, %v1644_v3, 0.0 }
 0x2c8   : > { %1647 = vpow2.f32 %v1157_v4  ;;  %v1144_v7 = vsub.f32 %v809_v40, %v1128_v5  ;;  %1169 = vadd.xlane.f32.xlu1 %v1168_v6 }
 0x2ca   : > { %v1155_v8 = vmul.f32 1.442695, %v1144_v7 }
 0x2cb   : > { %v1137_v9 = vpop.xlane.xlu1 %1136 }
 0x2cc   : > { %1649 = vpow2.f32 %v1155_v8  ;;  %v1147_v10 = vsub.f32 %v1037_v43, %v1137_v9 }
 0x2ce   : > { %v1646_v11 = vpop.eup %1645  ;;  %v1161_v12 = vmul.f32 1.442695, %v1147_v10 }
 0x2cf   : > { %v1134_v13 = vpop.xlane.xlu1 %1133  ;;  %v1171_v14 = vsel %vm1116_vm3, %v1646_v11, 0.0 }
 0x2d0   : > { %1651 = vpow2.f32 %v1161_v12  ;;  %v1146_v15 = vsub.f32 %v961_v47, %v1134_v13  ;;  %1172 = vadd.xlane.f32.xlu0 %v1171_v14 }
 0x2d2   : > { %v1648_v16 = vpop.eup %1647  ;;  %v1159_v17 = vmul.f32 1.442695, %v1146_v15 }
 0x2d3   : > { %v1177_v18 = vsel %vm1116_vm3, %v1648_v16, 0.0 }
 0x2d4   : > { %1653 = vpow2.f32 %v1159_v17  ;;  %1178 = vadd.xlane.f32.xlu0 %v1177_v18 }
 0x2d6   : > { %v1650_v19 = vpop.eup %1649 }
 0x2d7   : > { %v1140_v20 = vpop.xlane.xlu1 %1139  ;;  %v1174_v21 = vsel %vm1116_vm3, %v1650_v19, 0.0 }
 0x2d8   : > { %v1148_v24 = vsub.f32 %v1113_v51, %v1140_v20  ;;  %1175 = vadd.xlane.f32.xlu1 %v1174_v21 }
 0x2da   : > { %v1652_v25 = vpop.eup %1651  ;;  %v1163_v26 = vmul.f32 1.442695, %v1148_v24 }
 0x2db   : > { %v1183_v27 = vsel %vm1116_vm3, %v1652_v25, 0.0 }
 0x2dc   : > { %1655 = vpow2.f32 %v1163_v26  ;;  %1184 = vadd.xlane.f32.xlu0 %v1183_v27 }
 0x2de   : > { %v1654_v28 = vpop.eup %1653 }
 0x2df   : > { %v1180_v22 = vsel %vm1116_vm3, %v1654_v28, 0.0 }
 0x2e0   : > { %1181 = vadd.xlane.f32.xlu1 %v1180_v22 }
 0x2e6   : > { %v1656_v29 = vpop.eup %1655 }
 0x2e7   : > { %v1186_v30 = vsel %vm1116_vm3, %v1656_v29, 0.0 }
 0x2e8   : > { %1187 = vadd.xlane.f32.xlu1 %v1186_v30 }
 0x34d   : > { %v1167_v31 = vpop.xlane.xlu1 %1166 }
 0x34e   : > { %1657 = vrcp.f32 %v1167_v31 }
 0x355   : > { %v1170_v32 = vpop.xlane.xlu1 %1169 }
 0x356   : > { %1659 = vrcp.f32 %v1170_v32 }
 0x358   : > { %v1658_v33 = vpop.eup %1657 }
 0x359   : > { %v1197_v23 = vmul.f32 %v1658_v33, %v1642_v60 }
 0x35b   : > { %1205 = vst.msk [vmem:[%s2133_s15] sm:$0xf] %vm1116_vm3, %v1197_v23 }
 0x35d   : > { %v1173_v34 = vpop.xlane.xlu0 %1172 }
 0x35e   : > { %1661 = vrcp.f32 %v1173_v34 }
 0x360   : > { %v1660_v35 = vpop.eup %1659 }
 0x361   : > { %v1198_v36 = vmul.f32 %v1660_v35, %v1644_v3  ;;  %v1179_v37 = vpop.xlane.xlu0 %1178 }
 0x362   : > { %1663 = vrcp.f32 %v1179_v37 }
 0x363   : > { %1206 = vst.msk [vmem:[%s2133_s15 + $0x4] sm:$0xf] %vm1116_vm3, %v1198_v36 }
 0x365   : > { %v1176_v38 = vpop.xlane.xlu1 %1175 }
 0x366   : > { %1665 = vrcp.f32 %v1176_v38 }
 0x368   : > { %v1662_v39 = vpop.eup %1661 }
 0x369   : > { %v1199_v40 = vmul.f32 %v1662_v39, %v1646_v11  ;;  %v1185_v41 = vpop.xlane.xlu0 %1184 }
 0x36a   : > { %1667 = vrcp.f32 %v1185_v41 }
 0x36b   : > { %1207 = vst.msk [vmem:[%s2133_s15 + $0x8] sm:$0xf] %vm1116_vm3, %v1199_v40 }
 0x36c   : > { %v1664_v42 = vpop.eup %1663 }
 0x36d   : > { %v1201_v43 = vmul.f32 %v1664_v42, %v1648_v16  ;;  %v1182_v44 = vpop.xlane.xlu1 %1181 }
 0x36e   : > { %1669 = vrcp.f32 %v1182_v44 }
 0x36f   : > { %1209 = vst.msk [vmem:[%s2133_s15 + $0x10] sm:$0xf] %vm1116_vm3, %v1201_v43 }
 0x370   : > { %v1666_v45 = vpop.eup %1665 }
 0x371   : > { %v1200_v46 = vmul.f32 %v1666_v45, %v1650_v19 }
 0x373   : > { %1208 = vst.msk [vmem:[%s2133_s15 + $0xc] sm:$0xf] %vm1116_vm3, %v1200_v46 }
 0x374   : > { %v1668_v47 = vpop.eup %1667 }
 0x375   : > { %v1203_v48 = vmul.f32 %v1668_v47, %v1652_v25  ;;  %v1188_v49 = vpop.xlane.xlu1 %1187 }
 0x376   : > { %1671 = vrcp.f32 %v1188_v49 }
 0x377   : > { %1211 = vst.msk [vmem:[%s2133_s15 + $0x18] sm:$0xf] %vm1116_vm3, %v1203_v48 }
 0x378   : > { %v1670_v50 = vpop.eup %1669 }
 0x379   : > { %v1202_v51 = vmul.f32 %v1670_v50, %v1654_v28 }
 0x37b   : > { %1210 = vst.msk [vmem:[%s2133_s15 + $0x14] sm:$0xf] %vm1116_vm3, %v1202_v51 }
 0x380   : > { %v1672_v52 = vpop.eup %1671 }
 0x381   : > { %v1204_v53 = vmul.f32 %v1672_v52, %v1656_v29 }
 0x383   : > { %1212 = vst.msk [vmem:[%s2133_s15 + $0x1c] sm:$0xf] %vm1116_vm3, %v1204_v53 }
 0x384   : > { %1744 = shalt.err (!%p1741_p7)
}
 0x385   : > { %s1745_s16 = scalar_lea.hbm %s2154_s11, 512  ;;  %s1749_s6 = scalar_lea.hbm %s2207_s5, 1024 }
 0x386   : > { %p1746_p9 = scmp.ne.s32.totalorder %s2154_s11, %s1745_s16  ;;  %p1750_p5 = scmp.lt.u32.totalorder %s2154_s11, %s2207_s5 }
 0x387   : > { %p1751_p11 = scmp.lt.u32.totalorder %s1749_s6, %s1745_s16  ;;  %p1753_p4 = scmp.lt.u32.totalorder %s1745_s16, %s2154_s11 }
 0x388   : > { %p1747_p1 = pnand %p1746_p9, %p1938_p12 }
 0x389   : > { %p1752_p2 = por %p1751_p11, %p1750_p5 }
 0x38a   : > { %p1748_p0 = pneg %p1747_p1 }
 0x38b   : > { %p1754_p6 = por %p1753_p4, %p1752_p2 }
 0x38d   : > { %p1755_p8 = pnand %p1754_p6, %p1748_p0 }
 0x38f   : > { %1758 = shalt.err (!%p1755_p8)
}
 0x390   : > { %s1812_s29 = smov 64   ;;  %s1813_s27 = smov 4  }
 0x391   : > { %1549 = dma.vmem_to_hbm [thread:$0]  (%p1938_p12), %s2156_s28, 512, %s2154_s11, %s1214_s12, %s1812_s29, %s1812_s29, %s1813_s27  }
 0x392 PF: > { %s1242_s10 = sand.u32 1, %s1789_s18   ;;  %p2224_p10 = scmp.ne.s32.totalorder %s2212_s25, 0 }
 0x393   : > { %p2225_p13 = scmp.ge.s32.totalorder %s1801_s21, 2  ;;  %s1243_s13 = scalar_lea.sflag [#allocation4], %s1242_s10 }
 0x395   : > { %p1560_p3 = pnand %p2225_p13, %p2224_p10 }
 0x397   : > { %1784 = dma.done.wait (!%p1560_p3), %s1243_s13, 512  }
 0x398   : > { %1786 = vsyncadd (!%p1560_p3), %s1243_s13, 4294966784  ;;  %p19_p7 = scmp.ge.s32.totalorder %s1900_s30, 4   ;;  %s2226_s18 = smov %s1793_s19 }
 0x399   : > { %s2227_s19 = smov %s1797_s20  ;;  %s2228_s20 = smov %s1934_s8 }
 0x39a   : > { %s2229_s21 = smov %s1900_s30  ;;  %21 = sbr.rel (!%p19_p7) target bundleno = 6 (0x6), region = 89 }
 0x3a1   :  { %1248 = vsyncpa [#allocation3], 1 }
 0x3a2   :  { %1250 = vsyncpa [#allocation3 + $0x1], 1 }
 0x3a3   :  { %1251 = vsyncpa [#allocation6], 1 }
 0x3a4   :  { %1252 = vsyncpa [#allocation4], 1 }
 0x3a5   :  { %1254 = vsyncpa [#allocation4 + $0x1], 1 }

</bundles_post_ra>
